<compile_context>
chip_gen: v5e
topology: v5e:2x2
jax: 0.10.0
libtpu: 0.0.40
codegen_flags: <defaults>
</compile_context>

<pallas_src>
import math
from functools import partial

import jax
import jax.numpy as jnp
from jax.experimental import pallas as pl
from jax.experimental.pallas import tpu as pltpu


# ----------------------------------------------------------------------------
# Chip detection (gates megacore splitting and preferred N-tile width)
# ----------------------------------------------------------------------------
def _detect_tpu():
    kind = ""
    try:
        kind = jax.devices()[0].device_kind.lower()
    except Exception:
        pass
    num_tc = 2 if "v7" in kind else 1            # only v7x has 2 TCs per chip here
    bn_candidates = (128, 256) if "v5" in kind else (256, 128)
    return num_tc, bn_candidates


_NUM_TC, _BN_CANDIDATES = _detect_tpu()
_VMEM_BUDGET = 24 * 1024 * 1024                  # headroom under 32 MiB scoped default


# ----------------------------------------------------------------------------
# In-kernel exact GELU (erf via Abramowitz&Stegun 7.1.26; divide on the EUP)
# ----------------------------------------------------------------------------
def _recip(x):
    if hasattr(pl, "reciprocal"):
        return pl.reciprocal(x, approx=True)     # EUP slot: free in this epilogue
    return 1.0 / x


def _erf_kernel(x):
    p = 0.3275911
    a1, a2, a3, a4, a5 = (0.254829592, -0.284496736, 1.421413741,
                          -1.453152027, 1.061405429)
    z = jnp.abs(x)
    t = _recip(1.0 + p * z)
    poly = ((((a5 * t + a4) * t + a3) * t + a2) * t + a1) * t
    e = 1.0 - poly * jnp.exp(-z * z)
    return jnp.where(x >= 0, e, -e)


def _gelu_kernel(x):
    # erf-based (exact) GELU, matches nn.GELU() to f32/bf16 noise level
    return 0.5 * x * (1.0 + _erf_kernel(x * 0.7071067811865476))


# ----------------------------------------------------------------------------
# Pallas matmul kernels: bf16 operands, f32 accumulation, fused bias (+GELU)
# ----------------------------------------------------------------------------
def _mm_bias_single_kernel(a_ref, b_ref, bias_ref, o_ref, *, apply_gelu):
    # K fits in one strip: no accumulator scratch, no predicates.
    out = jnp.dot(a_ref[...], b_ref[...],
                  preferred_element_type=jnp.float32) + bias_ref[...]
    if apply_gelu:
        out = _gelu_kernel(out)
    o_ref[...] = out.astype(o_ref.dtype)


def _mm_bias_kernel(a_ref, b_ref, bias_ref, o_ref, acc_ref, *, apply_gelu):
    @pl.when(pl.program_id(2) == 0)
    def _():
        acc_ref[...] = jnp.zeros_like(acc_ref)

    acc_ref[...] += jnp.dot(a_ref[...], b_ref[...],
                            preferred_element_type=jnp.float32)

    @pl.when(pl.program_id(2) == pl.num_programs(2) - 1)
    def _():
        out = acc_ref[...] + bias_ref[...]
        if apply_gelu:
            out = _gelu_kernel(out)
        o_ref[...] = out.astype(o_ref.dtype)


def _round_up(x, m):
    return -(-x // m) * m


def _pick_block(dim, candidates):
    for c in candidates:
        if c <= dim and dim % c == 0:
            return c
    return dim


_BK_CANDIDATES = (9216, 8192, 6144, 4608, 4096, 3072, 2304, 2048,
                  1536, 1152, 1024, 768, 640, 512, 384, 256, 128)


def _vmem_bytes(BM, BN, BK, out_bytes):
    # double-buffered bf16 A/B tiles + f32 acc scratch + double-buffered output + bias
    return (2 * (BM * BK + BK * BN) * 2 + BM * BN * 4
            + 2 * BM * BN * out_bytes + 4 * BN * 4)


def matmul_bias(a, w, b, *, gelu=False, out_dtype=jnp.float32):
    """a: (M,K), w: (K,N), b: (N,) -> (M,N) on the MXU via Pallas.

    Shape-adaptive tiling: no K/N padding (full-dim blocks when not 128-aligned),
    M padded only to a multiple of 8.  Tiny GEMMs go to XLA.
    """
    a = a.astype(jnp.bfloat16)
    w = w.astype(jnp.bfloat16)
    b = b.astype(jnp.float32)
    M, K = a.shape
    _, N = w.shape

    # Tiny contractions / outputs / deep tiny-M stages: XLA fuses these better
    # than dozens of sub-microsecond Pallas launches at ~3% MXU occupancy.
    if M < 64 or K < 64 or N < 64:
        out = jnp.dot(a, w, preferred_element_type=jnp.float32) + b
        if gelu:
            out = jax.nn.gelu(out, approximate=False)
        return out.astype(out_dtype)

    Mp = _round_up(M, 8)
    if Mp != M:
        a = jnp.pad(a, ((0, Mp - M), (0, 0)))

    BM = _pick_block(Mp, (512, 256, 128, 64, 32, 16, 8))
    BN = _pick_block(N, _BN_CANDIDATES) if N % 128 == 0 else N

    out_bytes = jnp.dtype(out_dtype).itemsize
    BK = None
    if K <= 8192 and _vmem_bytes(BM, BN, K, out_bytes) <= _VMEM_BUDGET:
        BK = K                                       # full-K strip, 1 reduction step
    else:
        for c in _BK_CANDIDATES:
            if c <= K and K % c == 0 and _vmem_bytes(BM, BN, c, out_bytes) <= _VMEM_BUDGET:
                BK = c
                break
    if BK is None:                                   # not hit by this network
        Kp = _round_up(K, 512)
        a = jnp.pad(a, ((0, 0), (0, Kp - K)))
        w = jnp.pad(w, ((0, Kp - K), (0, 0)))
        K, BK = Kp, 512

    # Megacore: only split when the chip has >1 TensorCore AND the GEMM is large
    # enough that splitting beats the extra per-grid-step overhead; split BM only
    # (never drop BN), keeping (8,128) tiling valid for any config.
    if _NUM_TC > 1 and Mp * N * K >= (16 << 20):
        while (Mp // BM) * (N // BN) < _NUM_TC and BM >= 16 and (BM // 2) % 8 == 0:
            BM //= 2

    bias2d = b.reshape(1, N)
    kn = K // BK

    if kn == 1:
        out = pl.pallas_call(
            partial(_mm_bias_single_kernel, apply_gelu=gelu),
            out_shape=jax.ShapeDtypeStruct((Mp, N), out_dtype),
            grid_spec=pltpu.PrefetchScalarGridSpec(
                num_scalar_prefetch=0,
                grid=(Mp // BM, N // BN),
                in_specs=[
                    pl.BlockSpec((BM, BK), lambda i, j: (i, 0)),
                    pl.BlockSpec((BK, BN), lambda i, j: (0, j)),
                    pl.BlockSpec((1, BN), lambda i, j: (0, j)),
                ],
                out_specs=pl.BlockSpec((BM, BN), lambda i, j: (i, j)),
            ),
            compiler_params=pltpu.CompilerParams(
                dimension_semantics=("parallel", "parallel")),
        )(a, w, bias2d)
    else:
        out = pl.pallas_call(
            partial(_mm_bias_kernel, apply_gelu=gelu),
            out_shape=jax.ShapeDtypeStruct((Mp, N), out_dtype),
            grid_spec=pltpu.PrefetchScalarGridSpec(
                num_scalar_prefetch=0,
                grid=(Mp // BM, N // BN, kn),
                in_specs=[
                    pl.BlockSpec((BM, BK), lambda i, j, k: (i, k)),
                    pl.BlockSpec((BK, BN), lambda i, j, k: (k, j)),
                    pl.BlockSpec((1, BN), lambda i, j, k: (0, j)),
                ],
                out_specs=pl.BlockSpec((BM, BN), lambda i, j, k: (i, j)),
                scratch_shapes=[pltpu.VMEM((BM, BN), jnp.float32)],
            ),
            compiler_params=pltpu.CompilerParams(
                dimension_semantics=("parallel", "parallel", "arbitrary")),
        )(a, w, bias2d)

    return out if Mp == M else out[:M]


# ----------------------------------------------------------------------------
# Convolution = patch extraction (fused in the whole-graph jit) + Pallas matmul
# ----------------------------------------------------------------------------
def conv2d(x, w, b, stride=1, padding=0, dilation=1, gelu=False,
           out_dtype=jnp.float32):
    """x: NHWC, w: (KH,KW,Cin,Cout) bf16, b: (Cout,) f32."""
    N, H, W, Cin = x.shape
    KH, KW, _, Cout = w.shape
    xb = x.astype(jnp.bfloat16)                     # halve operand HBM bytes

    if KH == 1 and KW == 1 and stride == 1 and padding == 0 and dilation == 1:
        a = xb.reshape(N * H * W, Cin)
        Ho, Wo = H, W
    else:
        xp = jnp.pad(xb, ((0, 0), (padding, padding), (padding, padding), (0, 0)))
        Hp, Wp = H + 2 * padding, W + 2 * padding
        Ho = (Hp - (dilation * (KH - 1) + 1)) // stride + 1
        Wo = (Wp - (dilation * (KW - 1) + 1)) // stride + 1
        patches = []
        for kh in range(KH):
            for kw in range(KW):
                hs, ws = kh * dilation, kw * dilation
                patches.append(xp[:,
                                  hs:hs + (Ho - 1) * stride + 1:stride,
                                  ws:ws + (Wo - 1) * stride + 1:stride, :])
        # TODO(synk): tap-expanded operand still materialized once (bf16, in-jit);
        # in-kernel tap accumulation would avoid even this copy.
        a = jnp.concatenate(patches, axis=-1).reshape(N * Ho * Wo, KH * KW * Cin)

    out = matmul_bias(a, w.reshape(KH * KW * Cin, Cout), b, gelu=gelu,
                      out_dtype=out_dtype)
    return out.reshape(N, Ho, Wo, Cout)


def conv_apply(p, x, stride=1, padding=0, dilation=1, gelu=False,
               out_dtype=jnp.float32):
    return conv2d(x, p["w"], p["b"], stride=stride, padding=padding,
                  dilation=dilation, gelu=gelu, out_dtype=out_dtype)


# ----------------------------------------------------------------------------
# Norm helpers (plain JAX glue, fused by XLA under the whole-graph jit)
# ----------------------------------------------------------------------------
def batchnorm2d(x, eps=1e-5):
    # train-mode BatchNorm2d with gamma=1, beta=0 (fresh module)
    mean = jnp.mean(x, axis=(0, 1, 2), keepdims=True)
    var = jnp.mean(jnp.square(x - mean), axis=(0, 1, 2), keepdims=True)
    return (x - mean) * jax.lax.rsqrt(var + eps)


def layernorm_c(x, eps=1e-5):
    # LayerNorm over channels (== flatten(2).transpose + LN(C)), gamma=1, beta=0
    mean = jnp.mean(x, axis=-1, keepdims=True)
    var = jnp.mean(jnp.square(x - mean), axis=-1, keepdims=True)
    return (x - mean) * jax.lax.rsqrt(var + eps)


# ----------------------------------------------------------------------------
# Deterministic parameter construction (weights stored bf16, biases f32)
# ----------------------------------------------------------------------------
class KeyGen:
    def __init__(self, key):
        self.key = key

    def __call__(self):
        self.key, sub = jax.random.split(self.key)
        return sub


def conv_params(kg, cin, cout, k):
    std = math.sqrt(2.0 / (k * k * cout))
    w = jax.random.normal(kg(), (k, k, cin, cout), jnp.float32) * std
    return {"w": w.astype(jnp.bfloat16), "b": jnp.zeros((cout,), jnp.float32)}


def qconv_params(kg, cin, cout, k):
    # QuaternionConv: Hamilton-product block-structured weight from 4 components.
    # TODO(synk): the 4x block redundancy is not exploited in the matmul kernel;
    # the full dense (Cin,Cout) weight is streamed from HBM.
    assert cin % 4 == 0 and cout % 4 == 0
    co4, ci4 = cout // 4, cin // 4
    std = math.sqrt(2.0 / (k * k * cout))
    r, i, j, q = [jax.random.normal(kg(), (co4, ci4, k, k), jnp.float32) * std
                  for _ in range(4)]
    row_r = jnp.concatenate([r, -i, -j, -q], axis=1)
    row_i = jnp.concatenate([i, r, -q, j], axis=1)
    row_j = jnp.concatenate([j, q, r, -i], axis=1)
    row_k = jnp.concatenate([q, -j, i, r], axis=1)
    w_oihw = jnp.concatenate([row_r, row_i, row_j, row_k], axis=0)   # (Cout,Cin,k,k)
    w = jnp.transpose(w_oihw, (2, 3, 1, 0))                          # (k,k,Cin,Cout)
    return {"w": w.astype(jnp.bfloat16), "b": jnp.zeros((cout,), jnp.float32)}


def mlp_params(kg, dim, hidden):
    return {"fc1": qconv_params(kg, dim, hidden, 1),
            "dwconv": conv_params(kg, hidden, hidden, 3),   # reference DWConv: dense
            "fc2": qconv_params(kg, hidden, dim, 1)}


def attnmod_params(kg, dim):
    conv0 = qconv_params(kg, dim, dim, 3)
    cs = qconv_params(kg, 2 * dim, dim, 3)
    # conv(concat([a,a]), W) == conv(a, W[:,:,:dim,:] + W[:,:,dim:,:]): fold the
    # duplicated-input halves at build time -> K halved, no concat in the forward.
    w = cs["w"].astype(jnp.float32)
    cs_folded = {"w": (w[:, :, :dim, :] + w[:, :, dim:, :]).astype(jnp.bfloat16),
                 "b": cs["b"]}
    conv1 = qconv_params(kg, dim, dim, 1)
    return {"conv0": conv0, "conv_spatial": cs_folded, "conv1": conv1}


def spatialattn_params(kg, dim):
    return {"proj_1": qconv_params(kg, dim, dim, 3),
            "sgu": attnmod_params(kg, dim),
            "proj_2": qconv_params(kg, dim, dim, 1)}


def block_params(kg, dim, mlp_ratio):
    return {"attn": spatialattn_params(kg, dim),
            "mlp": mlp_params(kg, dim, int(dim * mlp_ratio))}


# ----------------------------------------------------------------------------
# Sub-module forwards
# ----------------------------------------------------------------------------
BF16 = jnp.bfloat16


def mlp_fwd(p, x):
    x = conv_apply(p["fc1"], x, out_dtype=BF16)                 # feeds dwconv only
    x = conv_apply(p["dwconv"], x, padding=1, gelu=True, out_dtype=BF16)
    x = conv_apply(p["fc2"], x)                                 # f32: joins residual
    return x


def attnmod_fwd(p, x):
    u = x
    a = conv_apply(p["conv0"], x, padding=1, out_dtype=BF16)    # feeds conv_spatial
    a = conv_apply(p["conv_spatial"], a, padding=3, dilation=3, out_dtype=BF16)
    a = conv_apply(p["conv1"], a)                               # f32: elementwise mul
    return u * a


def spatialattn_fwd(p, x):
    shortcut = x
    x = conv_apply(p["proj_1"], x, padding=1, gelu=True, out_dtype=BF16)
    x = attnmod_fwd(p["sgu"], x)
    x = conv_apply(p["proj_2"], x)                              # f32: joins shortcut
    return x + shortcut


def block_fwd(p, x):
    x = x + spatialattn_fwd(p["attn"], batchnorm2d(x))
    x = x + mlp_fwd(p["mlp"], batchnorm2d(x))
    return x


def run_blocks(stacked_params, x):
    # identical blocks within a stage -> lax.scan: one traced body per stage
    def body(carry, bp):
        return block_fwd(bp, carry), None
    x, _ = jax.lax.scan(body, x, stacked_params)
    return x


# ----------------------------------------------------------------------------
# Encoder (defaults from the reference: depths=[3,4,6,3], dims=[64,128,256,512])
# ----------------------------------------------------------------------------
EMBED_DIMS = (64, 128, 256, 512)
DEPTHS = (3, 4, 6, 3)
MLP_RATIOS = (4, 4, 4, 4)
NUM_STAGES = 4


def encoder_params(key):
    kg = KeyGen(key)
    con = conv_params(kg, 3, 16, 1)                 # conExpand: 1x1, 3->16
    # TODO(synk): `generateq` source not provided; approximated as a 1x1 conv 16->4.
    pre = conv_params(kg, 16, 4, 1)
    # Fold the two back-to-back 1x1 linear convs (no nonlinearity between) into one.
    w1 = con["w"][0, 0].astype(jnp.float32)         # (3, 16)
    w2 = pre["w"][0, 0].astype(jnp.float32)         # (16, 4)
    stem = {"w": (w1 @ w2).reshape(1, 1, 3, 4).astype(jnp.bfloat16),
            "b": con["b"] @ w2 + pre["b"]}
    p = {"stem": stem}
    for i in range(NUM_STAGES):
        cin = 4 if i == 0 else EMBED_DIMS[i - 1]
        p[f"patch_embed{i + 1}"] = conv_params(kg, cin, EMBED_DIMS[i], 3)
        blocks = [block_params(kg, EMBED_DIMS[i], MLP_RATIOS[i])
                  for _ in range(DEPTHS[i])]
        p[f"block{i + 1}"] = jax.tree_util.tree_map(
            lambda *xs: jnp.stack(xs), *blocks)
    return p


def encoder_fwd(p, x):
    x = conv_apply(p["stem"], x)                    # folded conExpand + pre_press
    feats = []
    for i in range(NUM_STAGES):
        # OverlapPatchEmbed: 3x3 conv, stride 2, pad 1, then BatchNorm2d
        x = conv_apply(p[f"patch_embed{i + 1}"], x, stride=2, padding=1)
        x = batchnorm2d(x)
        x = run_blocks(p[f"block{i + 1}"], x)
        x = layernorm_c(x)
        if i != NUM_STAGES - 1:
            feats.append(x)
    return x, feats


@jax.jit
def encoder_forward(params, x_nchw):
    """Encoder.forward: NCHW float32 in -> (NCHW out, [NCHW feature maps])."""
    x = jnp.transpose(x_nchw, (0, 2, 3, 1)).astype(jnp.float32)   # NHWC internally
    x, feats = encoder_fwd(params, x)
    x = jnp.transpose(x, (0, 3, 1, 2))
    feats = [jnp.transpose(f, (0, 3, 1, 2)) for f in feats]
    return x, feats


# ----------------------------------------------------------------------------
# Main
# ----------------------------------------------------------------------------
if __name__ == "__main__":
    # 4 stride-2 stages => spatial must be divisible by 16; keep shapes small.
    x = jax.random.uniform(jax.random.PRNGKey(0), (2, 3, 32, 32), jnp.float32)
    params = encoder_params(jax.random.PRNGKey(1))

    # quick self-check of the Pallas matmul (+fused GELU) path against XLA
    ka, kb = jax.random.split(jax.random.PRNGKey(2))
    a = jax.random.normal(ka, (128, 512), jnp.bfloat16)
    w = jax.random.normal(kb, (512, 256), jnp.bfloat16)
    bias = jnp.zeros((256,), jnp.float32)
    got = jax.jit(lambda a_, w_, b_: matmul_bias(a_, w_, b_))(a, w, bias)
    ref = jnp.dot(a, w, preferred_element_type=jnp.float32)
    assert bool(jnp.allclose(got, ref, rtol=2e-2, atol=2e-2)), "pallas matmul mismatch"
    got_g = jax.jit(lambda a_, w_, b_: matmul_bias(a_, w_, b_, gelu=True))(a, w, bias)
    ref_g = jax.nn.gelu(ref, approximate=False)
    assert bool(jnp.allclose(got_g, ref_g, rtol=5e-2, atol=5e-2)), "pallas gelu mismatch"

    out, feats = encoder_forward(params, x)
    out = jax.block_until_ready(out)
    feats = [jax.block_until_ready(f) for f in feats]

    assert out.shape == (2, 512, 2, 2), out.shape
    assert [tuple(f.shape) for f in feats] == [(2, 64, 16, 16), (2, 128, 8, 8),
                                               (2, 256, 4, 4)], [f.shape for f in feats]
    assert bool(jnp.all(jnp.isfinite(out)))
    for f in feats:
        assert bool(jnp.all(jnp.isfinite(f)))
    print("KERNEL_OK")
</pallas_src>

<mosaic_0001>
module attributes {stable_mosaic.version = 11 : i64} {
  func.func @_mm_bias_single_kernel(%arg0: i32, %arg1: i32, %arg2: memref<128x512xbf16, #tpu.memory_space<vmem>>, %arg3: memref<512x256xbf16, #tpu.memory_space<vmem>>, %arg4: memref<1x256xf32, #tpu.memory_space<vmem>>, %arg5: memref<128x256xf32, #tpu.memory_space<vmem>>) attributes {dimension_semantics = [#tpu.dimension_semantics<parallel>, #tpu.dimension_semantics<parallel>], iteration_bounds = array<i64: 1, 1>, scalar_prefetch = 0 : i64, scratch_operands = 0 : i64, tpu.core_type = #tpu.core_type<tc>, window_params = [{transform_indices = @transform_0, window_bounds = array<i64: 128, 512>}, {transform_indices = @transform_1, window_bounds = array<i64: 512, 256>}, {transform_indices = @transform_2, window_bounds = array<i64: 1, 256>}, {transform_indices = @transform_3, window_bounds = array<i64: 128, 256>}]} {
    %c0 = arith.constant 0 : index
    %c0_0 = arith.constant 0 : index
    %0 = vector.load %arg2[%c0, %c0_0] : memref<128x512xbf16, #tpu.memory_space<vmem>>, vector<128x512xbf16>
    %c0_1 = arith.constant 0 : index
    %c0_2 = arith.constant 0 : index
    %1 = vector.load %arg3[%c0_1, %c0_2] : memref<512x256xbf16, #tpu.memory_space<vmem>>, vector<512x256xbf16>
    %cst = arith.constant dense<0.000000e+00> : vector<128x256xf32>
    %2 = tpu.matmul %0, %1, %cst {dimension_numbers = #tpu.dot_dimension_numbers<[1], [0], [0], [1], [0, 0, 1, 1], [], []>} : vector<128x512xbf16>, vector<512x256xbf16>, vector<128x256xf32> -> vector<128x256xf32>
    %c0_3 = arith.constant 0 : index
    %c0_4 = arith.constant 0 : index
    %3 = vector.load %arg4[%c0_3, %c0_4] : memref<1x256xf32, #tpu.memory_space<vmem>>, vector<1x256xf32>
    %4 = vector.broadcast %3 : vector<1x256xf32> to vector<128x256xf32>
    %5 = arith.addf %2, %4 : vector<128x256xf32>
    %c0_5 = arith.constant 0 : index
    %c0_6 = arith.constant 0 : index
    %6 = vector.load %arg5[%c0_5, %c0_6] : memref<128x256xf32, #tpu.memory_space<vmem>>, vector<128x256xf32>
    tpu.vector_store %arg5[%c0_5, %c0_6], %5 {strides = array<i32>} : memref<128x256xf32, #tpu.memory_space<vmem>>, vector<128x256xf32>,
    return
  }
  func.func @transform_0(%arg0: i32, %arg1: i32) -> (i32, i32) {
    %c0_i32 = arith.constant 0 : i32
    %c0_i32_0 = arith.constant 0 : i32
    return %arg0, %c0_i32 : i32, i32
  }
  func.func @transform_1(%arg0: i32, %arg1: i32) -> (i32, i32) {
    %c0_i32 = arith.constant 0 : i32
    %c0_i32_0 = arith.constant 0 : i32
    return %c0_i32, %arg1 : i32, i32
  }
  func.func @transform_2(%arg0: i32, %arg1: i32) -> (i32, i32) {
    %c0_i32 = arith.constant 0 : i32
    %c0_i32_0 = arith.constant 0 : i32
    return %c0_i32, %arg1 : i32, i32
  }
  func.func @transform_3(%arg0: i32, %arg1: i32) -> (i32, i32) {
    %c0_i32 = arith.constant 0 : i32
    return %arg0, %arg1 : i32, i32
  }
}

</mosaic_0001>

<bundles_post_ra>
// kernel: _lambda_.1
= control target key start
LH: loop header
LB: loop body
LE: loop exit
PB: predicated region body
PF: predicated region fallthrough
CT: control target
= control target key end

     0   :  { %8 = vsyncpa [#allocation3], 0  ;;  %s1851_s0 = inlined_call_operand.hbm [shape: bf16[128,512], index: 0, kind: input, shape index: {}]   ;;  %s1852_s1 = inlined_call_operand.hbm [shape: bf16[512,256], index: 1, kind: input, shape index: {}]   ;;  %s1853_s2 = inlined_call_operand.vmem [shape: f32[1,256], index: 2, kind: input, shape index: {}]   ;;  %s1854_s3 = inlined_call_operand.hbm [shape: f32[128,256], index: 3, kind: output, shape index: {}]  }
   0x1   :  { %9 = vsyncpa [#allocation6], 0 }
   0x2   :  { %10 = vsyncpa [#allocation4], 0  ;;  %s15_s14 = sshll.u32 %s1851_s0, 4  ;;  %s1638_s15 = smov [#allocation2]   ;;  %s16_s14 = int_to_ptr.hbm [resolvable:$true] %s15_s14 }
   0x3   :  { %s17_s16 = sshll.u32 %s1638_s15, 4  ;;  %s28_s19 = sshll.u32 %s1852_s1, 4  ;;  %s18_s16 = int_to_ptr.vmem [resolvable:$true] %s17_s16  ;;  %s29_s19 = int_to_ptr.hbm [resolvable:$true] %s28_s19 }
   0x4   :  { %s1639_s20 = smov 256   ;;  %s1640_s21 = smov 16  }
   0x5   :  { %23 = dma.hbm_to_vmem [thread:$0]  %s16_s14, 4096, %s18_s16, [#allocation3], %s1639_s20, %s1639_s20, %s1640_s21  }
   0x6   :  { %s1641_s22 = smov [#allocation5]   ;;  %s1642_s24 = smov 128  }
   0x7   :  { %s30_s23 = sshll.u32 %s1641_s22, 4  ;;  %s1643_s0 = smov 8   ;;  %s31_s23 = int_to_ptr.vmem [resolvable:$true] %s30_s23 }
   0x8   :  { %36 = dma.hbm_to_vmem [thread:$0]  %s29_s19, 8192, %s31_s23, [#allocation6], %s1642_s24, %s1642_s24, %s1643_s0  }
   0x9   :  { %1632 = dma.done.wait [#allocation3], 4096  }
   0xa   :  { %1633 = vsyncadd [#allocation3], 4294963200 }
   0xb   :  { %1634 = dma.done.wait [#allocation6], 8192  }
   0xc   :  { %1635 = vsyncadd [#allocation6], 4294959104  ;;  %v1259_v0 = vld [vmem:[#allocation5 + $0x70] sm:$0xf]  ;;  %v1504_v1 = vld [vmem:[#allocation5 + $0x74] sm:$0xf0] }
   0xd   :  { %v1323_v2 = vld [vmem:[#allocation5 + $0xf0] sm:$0xf]  ;;  %v1260_v3 = vor.u32 %v1504_v1, %v1259_v0  ;;  %v1520_v4 = vld [vmem:[#allocation5 + $0xf4] sm:$0xf0]  ;;  %v1251_v11 = vld [vmem:[#allocation5 + $0x60] sm:$0xf] }
   0xe   :  { %v1387_v5 = vld [vmem:[#allocation5 + $0x170] sm:$0xf]  ;;  %v1536_v6 = vld [vmem:[#allocation5 + $0x174] sm:$0xf0]  ;;  %v1324_v7 = vor.u32 %v1520_v4, %v1323_v2  ;;  %v1502_v13 = vld [vmem:[#allocation5 + $0x64] sm:$0xf0] }
   0xf   :  { %v1388_v8 = vor.u32 %v1536_v6, %v1387_v5  ;;  %v1451_v9 = vld [vmem:[#allocation5 + $0x1f0] sm:$0xf]  ;;  %v1552_v10 = vld [vmem:[#allocation5 + $0x1f4] sm:$0xf0]  ;;  %629 = vmatpush.bf16.msra.mxu0 %v1260_v3  ;;  %v1315_v14 = vld [vmem:[#allocation5 + $0xe0] sm:$0xf]  ;;  %v1252_v16 = vor.u32 %v1502_v13, %v1251_v11 }
  0x10   :  { %v1452_v12 = vor.u32 %v1552_v10, %v1451_v9  ;;  %v1518_v15 = vld [vmem:[#allocation5 + $0xe4] sm:$0xf0]  ;;  %678 = vmatpush.bf16.msra.mxu1 %v1324_v7  ;;  %v1379_v18 = vld [vmem:[#allocation5 + $0x160] sm:$0xf]  ;;  %v1243_v23 = vld [vmem:[#allocation5 + $0x50] sm:$0xf] }
  0x11   :  { %727 = vmatpush.bf16.msra.mxu2 %v1388_v8  ;;  %v1316_v17 = vor.u32 %v1518_v15, %v1315_v14  ;;  %v1534_v19 = vld [vmem:[#allocation5 + $0x164] sm:$0xf0]  ;;  %v1443_v20 = vld [vmem:[#allocation5 + $0x1e0] sm:$0xf]  ;;  %v1500_v24 = vld [vmem:[#allocation5 + $0x54] sm:$0xf0] }
  0x12   :  { %776 = vmatpush.bf16.msra.mxu3 %v1452_v12  ;;  %v1380_v21 = vor.u32 %v1534_v19, %v1379_v18  ;;  %v1550_v22 = vld [vmem:[#allocation5 + $0x1e4] sm:$0xf0]  ;;  %v1307_v26 = vld [vmem:[#allocation5 + $0xd0] sm:$0xf]  ;;  %v1516_v27 = vld [vmem:[#allocation5 + $0xd4] sm:$0xf0]  ;;  %v1244_v29 = vor.u32 %v1500_v24, %v1243_v23 }
  0x13   :  { %v1444_v25 = vor.u32 %v1550_v22, %v1443_v20  ;;  %v1371_v28 = vld [vmem:[#allocation5 + $0x150] sm:$0xf]  ;;  %630 = vmatpush.bf16.msra.mxu0 %v1252_v16  ;;  %v1532_v30 = vld [vmem:[#allocation5 + $0x154] sm:$0xf0]  ;;  %v1308_v33 = vor.u32 %v1516_v27, %v1307_v26  ;;  %v1235_v35 = vld [vmem:[#allocation5 + $0x40] sm:$0xf] }
  0x14   :  { %v1435_v31 = vld [vmem:[#allocation5 + $0x1d0] sm:$0xf]  ;;  %v1548_v32 = vld [vmem:[#allocation5 + $0x1d4] sm:$0xf0]  ;;  %679 = vmatpush.bf16.msra.mxu1 %v1316_v17  ;;  %v1372_v34 = vor.u32 %v1532_v30, %v1371_v28  ;;  %v1498_v36 = vld [vmem:[#allocation5 + $0x44] sm:$0xf0] }
  0x15   :  { %728 = vmatpush.bf16.msra.mxu2 %v1380_v21  ;;  %v1299_v37 = vld [vmem:[#allocation5 + $0xc0] sm:$0xf]  ;;  %v1436_v38 = vor.u32 %v1548_v32, %v1435_v31  ;;  %v1514_v39 = vld [vmem:[#allocation5 + $0xc4] sm:$0xf0]  ;;  %v1236_v44 = vor.u32 %v1498_v36, %v1235_v35  ;;  %v1227_v47 = vld [vmem:[#allocation5 + $0x30] sm:$0xf] }
  0x16   :  { %777 = vmatpush.bf16.msra.mxu3 %v1444_v25  ;;  %v1363_v40 = vld [vmem:[#allocation5 + $0x140] sm:$0xf]  ;;  %v1530_v41 = vld [vmem:[#allocation5 + $0x144] sm:$0xf0]  ;;  %v1300_v45 = vor.u32 %v1514_v39, %v1299_v37  ;;  %v1496_v48 = vld [vmem:[#allocation5 + $0x34] sm:$0xf0] }
  0x17   :  { %v1427_v42 = vld [vmem:[#allocation5 + $0x1c0] sm:$0xf]  ;;  %v1546_v43 = vld [vmem:[#allocation5 + $0x1c4] sm:$0xf0]  ;;  %631 = vmatpush.bf16.msra.mxu0 %v1244_v29  ;;  %v1364_v46 = vor.u32 %v1530_v41, %v1363_v40  ;;  %v1291_v49 = vld [vmem:[#allocation5 + $0xb0] sm:$0xf]  ;;  %v1228_v56 = vor.u32 %v1496_v48, %v1227_v47 }
  0x18   :  { %680 = vmatpush.bf16.msra.mxu1 %v1308_v33  ;;  %v1428_v50 = vor.u32 %v1546_v43, %v1427_v42  ;;  %v1512_v51 = vld [vmem:[#allocation5 + $0xb4] sm:$0xf0]  ;;  %v1355_v52 = vld [vmem:[#allocation5 + $0x130] sm:$0xf]  ;;  %v1219_v59 = vld [vmem:[#allocation5 + $0x20] sm:$0xf] }
  0x19   :  { %729 = vmatpush.bf16.msra.mxu2 %v1372_v34  ;;  %v1528_v53 = vld [vmem:[#allocation5 + $0x134] sm:$0xf0]  ;;  %v1419_v54 = vld [vmem:[#allocation5 + $0x1b0] sm:$0xf]  ;;  %v1292_v57 = vor.u32 %v1512_v51, %v1291_v49  ;;  %v1494_v60 = vld [vmem:[#allocation5 + $0x24] sm:$0xf0] }
  0x1a   :  { %778 = vmatpush.bf16.msra.mxu3 %v1436_v38  ;;  %v1544_v55 = vld [vmem:[#allocation5 + $0x1b4] sm:$0xf0]  ;;  %v1356_v58 = vor.u32 %v1528_v53, %v1355_v52  ;;  %v1283_v61 = vld [vmem:[#allocation5 + $0xa0] sm:$0xf]  ;;  %v1510_v63 = vld [vmem:[#allocation5 + $0xa4] sm:$0xf0]  ;;  %v1220_v4 = vor.u32 %v1494_v60, %v1219_v59 }
  0x1b   :  { %632 = vmatpush.bf16.msra.mxu0 %v1236_v44  ;;  %v1420_v62 = vor.u32 %v1544_v55, %v1419_v54  ;;  %v1347_v0 = vld [vmem:[#allocation5 + $0x120] sm:$0xf]  ;;  %v1526_v1 = vld [vmem:[#allocation5 + $0x124] sm:$0xf0]  ;;  %v1284_v5 = vor.u32 %v1510_v63, %v1283_v61  ;;  %v1211_v7 = vld [vmem:[#allocation5 + $0x10] sm:$0xf] }
  0x1c   :  { %681 = vmatpush.bf16.msra.mxu1 %v1300_v45  ;;  %v1411_v2 = vld [vmem:[#allocation5 + $0x1a0] sm:$0xf]  ;;  %v1542_v3 = vld [vmem:[#allocation5 + $0x1a4] sm:$0xf0]  ;;  %v1348_v6 = vor.u32 %v1526_v1, %v1347_v0  ;;  %v1492_v8 = vld [vmem:[#allocation5 + $0x14] sm:$0xf0] }
  0x1d   :  { %730 = vmatpush.bf16.msra.mxu2 %v1364_v46  ;;  %v1275_v9 = vld [vmem:[#allocation5 + $0x90] sm:$0xf]  ;;  %v1412_v10 = vor.u32 %v1542_v3, %v1411_v2  ;;  %v1508_v11 = vld [vmem:[#allocation5 + $0x94] sm:$0xf0]  ;;  %v1203_v16 = vld [vmem:[#allocation5] sm:$0xf]  ;;  %v1212_v17 = vor.u32 %v1492_v8, %v1211_v7 }
  0x1e   :  { %779 = vmatpush.bf16.msra.mxu3 %v1428_v50  ;;  %v1339_v12 = vld [vmem:[#allocation5 + $0x110] sm:$0xf]  ;;  %v1524_v13 = vld [vmem:[#allocation5 + $0x114] sm:$0xf0]  ;;  %v1490_v18 = vld [vmem:[#allocation5 + $0x4] sm:$0xf0]  ;;  %v1276_v21 = vor.u32 %v1508_v11, %v1275_v9 }
  0x1f   :  { %633 = vmatpush.bf16.msra.mxu0 %v1228_v56  ;;  %v1403_v14 = vld [vmem:[#allocation5 + $0x190] sm:$0xf]  ;;  %v1540_v15 = vld [vmem:[#allocation5 + $0x194] sm:$0xf0]  ;;  %v1267_v19 = vld [vmem:[#allocation5 + $0x80] sm:$0xf]  ;;  %v1340_v22 = vor.u32 %v1524_v13, %v1339_v12  ;;  %v1204_v34 = vor.u32 %v1490_v18, %v1203_v16 }
  0x20   :  { %682 = vmatpush.bf16.msra.mxu1 %v1292_v57  ;;  %v1506_v20 = vld [vmem:[#allocation5 + $0x84] sm:$0xf0]  ;;  %v1331_v23 = vld [vmem:[#allocation5 + $0x100] sm:$0xf]  ;;  %v1404_v26 = vor.u32 %v1540_v15, %v1403_v14  ;;  %v1459_v29 = vld [vmem:[#allocation2 + $0xc] sm:$0xf0] }
  0x21   :  { %731 = vmatpush.bf16.msra.mxu2 %v1356_v58  ;;  %v1522_v24 = vld [vmem:[#allocation5 + $0x104] sm:$0xf0]  ;;  %v1395_v25 = vld [vmem:[#allocation5 + $0x180] sm:$0xf]  ;;  %v1457_v30 = vld [vmem:[#allocation2 + $0x4] sm:$0xf]  ;;  %v1268_v38 = vor.u32 %v1506_v20, %v1267_v19 }
  0x22   :  { %780 = vmatpush.bf16.msra.mxu3 %v1420_v62  ;;  %v1538_v27 = vld [vmem:[#allocation5 + $0x184] sm:$0xf0]  ;;  %v1075_v28 = vld [vmem:[#allocation2] sm:$0xf]  ;;  %v1077_v31 = vld [vmem:[#allocation2 + $0x10] sm:$0xf0]  ;;  %v1332_v39 = vor.u32 %v1522_v24, %v1331_v23 }
  0x23   :  { %634 = vmatpush.bf16.msra.mxu0 %v1220_v4  ;;  %v1535_v32 = vld [vmem:[#allocation5 + $0x174] sm:$0xf]  ;;  %v1389_v33 = vld [vmem:[#allocation5 + $0x178] sm:$0xf0]  ;;  %v1083_v35 = vld [vmem:[#allocation2 + $0x8] sm:$0xf]  ;;  %v1396_v43 = vor.u32 %v1538_v27, %v1395_v25  ;;  %v1674_v48 = vor.u32 %v1459_v29, %v1075_v28  ;;  %v1676_v53 = vor.u32 %v1457_v30, %v1077_v31 }
  0x24   :  { %683 = vmatpush.bf16.msra.mxu1 %v1284_v5  ;;  %v1551_v36 = vld [vmem:[#allocation5 + $0x1f4] sm:$0xf]  ;;  %v1453_v37 = vld [vmem:[#allocation5 + $0x1f8] sm:$0xf0]  ;;  %v1460_v40 = vld [vmem:[#allocation2 + $0x14] sm:$0xf0]  ;;  %v1392_v44 = vor.u32 %v1535_v32, %v1389_v33 }
  0x25   :  { %732 = vmatpush.bf16.msra.mxu2 %v1348_v6  ;;  %v1458_v41 = vld [vmem:[#allocation2 + $0xc] sm:$0xf]  ;;  %v1085_v42 = vld [vmem:[#allocation2 + $0x18] sm:$0xf0]  ;;  %v1503_v45 = vld [vmem:[#allocation5 + $0x74] sm:$0xf]  ;;  %v1456_v49 = vor.u32 %v1551_v36, %v1453_v37  ;;  %v1678_v54 = vor.u32 %v1460_v40, %v1083_v35 }
  0x26   :  { %781 = vmatpush.bf16.msra.mxu3 %v1412_v10  ;;  %v1261_v46 = vld [vmem:[#allocation5 + $0x78] sm:$0xf0]  ;;  %v1519_v47 = vld [vmem:[#allocation5 + $0xf4] sm:$0xf]  ;;  %v1533_v51 = vld [vmem:[#allocation5 + $0x164] sm:$0xf]  ;;  %v1680_v57 = vor.u32 %v1458_v41, %v1085_v42 }
  0x27   :  { %635 = vmatpush.bf16.msra.mxu0 %v1212_v17  ;;  %v1325_v50 = vld [vmem:[#allocation5 + $0xf8] sm:$0xf0]  ;;  %v1381_v52 = vld [vmem:[#allocation5 + $0x168] sm:$0xf0]  ;;  %v1549_v55 = vld [vmem:[#allocation5 + $0x1e4] sm:$0xf]  ;;  %v1264_v58 = vor.u32 %v1503_v45, %v1261_v46 }
  0x28   :  { %684 = vmatpush.bf16.msra.mxu1 %v1276_v21  ;;  %v1445_v56 = vld [vmem:[#allocation5 + $0x1e8] sm:$0xf0]  ;;  %v1328_v59 = vor.u32 %v1519_v47, %v1325_v50  ;;  %v1384_v60 = vor.u32 %v1533_v51, %v1381_v52  ;;  %v1501_v61 = vld [vmem:[#allocation5 + $0x64] sm:$0xf]  ;;  %v1531_v3 = vld [vmem:[#allocation5 + $0x154] sm:$0xf] }
  0x29   :  { %733 = vmatpush.bf16.msra.mxu2 %v1340_v22  ;;  %v1253_v62 = vld [vmem:[#allocation5 + $0x68] sm:$0xf0]  ;;  %v1448_v63 = vor.u32 %v1549_v55, %v1445_v56  ;;  %v1517_v0 = vld [vmem:[#allocation5 + $0xe4] sm:$0xf]  ;;  %v1373_v4 = vld [vmem:[#allocation5 + $0x158] sm:$0xf0] }
  0x2a   :  { %782 = vmatpush.bf16.msra.mxu3 %v1404_v26  ;;  %v1317_v1 = vld [vmem:[#allocation5 + $0xe8] sm:$0xf0]  ;;  %v1256_v2 = vor.u32 %v1501_v61, %v1253_v62  ;;  %v1499_v5 = vld [vmem:[#allocation5 + $0x54] sm:$0xf]  ;;  %v1376_v7 = vor.u32 %v1531_v3, %v1373_v4  ;;  %v1245_v8 = vld [vmem:[#allocation5 + $0x58] sm:$0xf0] }
  0x2b   :  { %636 = vmatpush.bf16.msra.mxu0 %v1204_v34  ;;  %v1320_v6 = vor.u32 %v1517_v0, %v1317_v1  ;;  %v1547_v9 = vld [vmem:[#allocation5 + $0x1d4] sm:$0xf]  ;;  %v1437_v10 = vld [vmem:[#allocation5 + $0x1d8] sm:$0xf0]  ;;  %v1248_v14 = vor.u32 %v1499_v5, %v1245_v8  ;;  %v1091_v16 = vld [vmem:[#allocation2 + $0x20] sm:$0xf] }
  0x2c   :  { %685 = vmatpush.bf16.msra.mxu1 %v1268_v38  ;;  %v1440_v11 = vor.u32 %v1547_v9, %v1437_v10  ;;  %v1515_v12 = vld [vmem:[#allocation5 + $0xd4] sm:$0xf]  ;;  %v1309_v13 = vld [vmem:[#allocation5 + $0xd8] sm:$0xf0]  ;;  %v1463_v17 = vld [vmem:[#allocation2 + $0x2c] sm:$0xf0] }
  0x2d   :  { %734 = vmatpush.bf16.msra.mxu2 %v1332_v39  ;;  %v1312_v15 = vor.u32 %v1515_v12, %v1309_v13  ;;  %v1461_v18 = vld [vmem:[#allocation2 + $0x24] sm:$0xf]  ;;  %v1093_v19 = vld [vmem:[#allocation2 + $0x30] sm:$0xf0]  ;;  %v1099_v20 = vld [vmem:[#allocation2 + $0x28] sm:$0xf]  ;;  %v1686_v24 = vor.u32 %v1463_v17, %v1091_v16 }
  0x2e   :  { %783 = vmatpush.bf16.msra.mxu3 %v1396_v43  ;;  %637 = vmatmul.bf16.vlgmr.msra.gmra.mxu0 %v1674_v48  ;;  %v1464_v21 = vld [vmem:[#allocation2 + $0x34] sm:$0xf0]  ;;  %v1462_v22 = vld [vmem:[#allocation2 + $0x2c] sm:$0xf]  ;;  %v1101_v23 = vld [vmem:[#allocation2 + $0x38] sm:$0xf0]  ;;  %v1688_v25 = vor.u32 %v1461_v18, %v1093_v19 }
  0x2f   :  { %686 = vmatmul.bf16.vlgmr.msra.gmra.mxu1 %v1676_v53  ;;  %825 = vmatpush.bf16.msrb.mxu0 %v1264_v58  ;;  %v1690_v26 = vor.u32 %v1464_v21, %v1099_v20  ;;  %v1692_v27 = vor.u32 %v1462_v22, %v1101_v23  ;;  %v1529_v28 = vld [vmem:[#allocation5 + $0x144] sm:$0xf]  ;;  %v1365_v29 = vld [vmem:[#allocation5 + $0x148] sm:$0xf0]  ;;  %v1107_v40 = vld [vmem:[#allocation2 + $0x40] sm:$0xf] }
  0x30   :  { %735 = vmatmul.bf16.vlgmr.msra.gmra.mxu2 %v1678_v54  ;;  %874 = vmatpush.bf16.msrb.mxu1 %v1328_v59  ;;  %v1497_v30 = vld [vmem:[#allocation5 + $0x44] sm:$0xf]  ;;  %v1368_v31 = vor.u32 %v1529_v28, %v1365_v29  ;;  %v1237_v32 = vld [vmem:[#allocation5 + $0x48] sm:$0xf0]  ;;  %v1467_v41 = vld [vmem:[#allocation2 + $0x4c] sm:$0xf0] }
  0x31   :  { %923 = vmatpush.bf16.msrb.mxu2 %v1392_v44  ;;  %784 = vmatmul.bf16.vlgmr.msra.gmra.mxu3 %v1680_v57  ;;  %v1545_v33 = vld [vmem:[#allocation5 + $0x1c4] sm:$0xf]  ;;  %v1429_v34 = vld [vmem:[#allocation5 + $0x1c8] sm:$0xf0]  ;;  %v1240_v35 = vor.u32 %v1497_v30, %v1237_v32  ;;  %v1109_v43 = vld [vmem:[#allocation2 + $0x50] sm:$0xf0] }
  0x32   :  { %972 = vmatpush.bf16.msrb.mxu3 %v1456_v49  ;;  %v1432_v36 = vor.u32 %v1545_v33, %v1429_v34  ;;  %v1513_v37 = vld [vmem:[#allocation5 + $0xc4] sm:$0xf]  ;;  %v1301_v38 = vld [vmem:[#allocation5 + $0xc8] sm:$0xf0]  ;;  %v1115_v44 = vld [vmem:[#allocation2 + $0x48] sm:$0xf]  ;;  %v1698_v49 = vor.u32 %v1467_v41, %v1107_v40 }
  0x33   :  { %826 = vmatpush.bf16.msrb.mxu0 %v1256_v2  ;;  %v1304_v39 = vor.u32 %v1513_v37, %v1301_v38  ;;  %v1465_v42 = vld [vmem:[#allocation2 + $0x44] sm:$0xf]  ;;  %v1468_v45 = vld [vmem:[#allocation2 + $0x54] sm:$0xf0]  ;;  %v1466_v46 = vld [vmem:[#allocation2 + $0x4c] sm:$0xf] }
  0x34   :  { %875 = vmatpush.bf16.msrb.mxu1 %v1320_v6  ;;  %v1117_v47 = vld [vmem:[#allocation2 + $0x58] sm:$0xf0]  ;;  %v1700_v50 = vor.u32 %v1465_v42, %v1109_v43  ;;  %v1702_v51 = vor.u32 %v1468_v45, %v1115_v44  ;;  %v1527_v55 = vld [vmem:[#allocation5 + $0x134] sm:$0xf]  ;;  %v1123_v4 = vld [vmem:[#allocation2 + $0x60] sm:$0xf] }
  0x35   :  { %924 = vmatpush.bf16.msrb.mxu2 %v1384_v60  ;;  %v1704_v52 = vor.u32 %v1466_v46, %v1117_v47  ;;  %v1357_v56 = vld [vmem:[#allocation5 + $0x138] sm:$0xf0]  ;;  %v1495_v58 = vld [vmem:[#allocation5 + $0x34] sm:$0xf]  ;;  %v1471_v5 = vld [vmem:[#allocation2 + $0x6c] sm:$0xf0] }
  0x36   :  { %973 = vmatpush.bf16.msrb.mxu3 %v1448_v63  ;;  %v1360_v59 = vor.u32 %v1527_v55, %v1357_v56  ;;  %v1229_v60 = vld [vmem:[#allocation5 + $0x38] sm:$0xf0]  ;;  %v1543_v61 = vld [vmem:[#allocation5 + $0x1b4] sm:$0xf]  ;;  %v1469_v6 = vld [vmem:[#allocation2 + $0x64] sm:$0xf]  ;;  %v1710_v12 = vor.u32 %v1471_v5, %v1123_v4 }
  0x37   :  { %827 = vmatpush.bf16.msrb.mxu0 %v1248_v14  ;;  %v1421_v62 = vld [vmem:[#allocation5 + $0x1b8] sm:$0xf0]  ;;  %v1232_v63 = vor.u32 %v1495_v58, %v1229_v60  ;;  %v1511_v1 = vld [vmem:[#allocation5 + $0xb4] sm:$0xf]  ;;  %v1131_v8 = vld [vmem:[#allocation2 + $0x68] sm:$0xf] }
  0x38   :  { %876 = vmatpush.bf16.msrb.mxu1 %v1312_v15  ;;  %v1424_v0 = vor.u32 %v1543_v61, %v1421_v62  ;;  %v1293_v2 = vld [vmem:[#allocation5 + $0xb8] sm:$0xf0]  ;;  %v1472_v9 = vld [vmem:[#allocation2 + $0x74] sm:$0xf0]  ;;  %v1470_v10 = vld [vmem:[#allocation2 + $0x6c] sm:$0xf] }
  0x39   :  { %925 = vmatpush.bf16.msrb.mxu2 %v1376_v7  ;;  %v1296_v3 = vor.u32 %v1511_v1, %v1293_v2  ;;  %v1125_v7 = vld [vmem:[#allocation2 + $0x70] sm:$0xf0]  ;;  %v1714_v14 = vor.u32 %v1472_v9, %v1131_v8  ;;  %v1525_v16 = vld [vmem:[#allocation5 + $0x124] sm:$0xf]  ;;  %v1349_v17 = vld [vmem:[#allocation5 + $0x128] sm:$0xf0] }
  0x3a   :  { %974 = vmatpush.bf16.msrb.mxu3 %v1440_v11  ;;  %v1133_v11 = vld [vmem:[#allocation2 + $0x78] sm:$0xf0]  ;;  %v1712_v13 = vor.u32 %v1469_v6, %v1125_v7  ;;  %v1493_v18 = vld [vmem:[#allocation5 + $0x24] sm:$0xf]  ;;  %v1352_v19 = vor.u32 %v1525_v16, %v1349_v17  ;;  %v1221_v20 = vld [vmem:[#allocation5 + $0x28] sm:$0xf0] }
  0x3b   :  { %828 = vmatpush.bf16.msrb.mxu0 %v1240_v35  ;;  %v1716_v15 = vor.u32 %v1470_v10, %v1133_v11  ;;  %v1541_v21 = vld [vmem:[#allocation5 + $0x1a4] sm:$0xf]  ;;  %v1413_v22 = vld [vmem:[#allocation5 + $0x1a8] sm:$0xf0]  ;;  %v1224_v23 = vor.u32 %v1493_v18, %v1221_v20  ;;  %v1139_v32 = vld [vmem:[#allocation2 + $0x80] sm:$0xf] }
  0x3c   :  { %877 = vmatpush.bf16.msrb.mxu1 %v1304_v39  ;;  %v1416_v28 = vor.u32 %v1541_v21, %v1413_v22  ;;  %v1509_v29 = vld [vmem:[#allocation5 + $0xa4] sm:$0xf]  ;;  %v1285_v30 = vld [vmem:[#allocation5 + $0xa8] sm:$0xf0]  ;;  %v1475_v33 = vld [vmem:[#allocation2 + $0x8c] sm:$0xf0] }
  0x3d   :  { %926 = vmatpush.bf16.msrb.mxu2 %v1368_v31  ;;  %v1288_v31 = vor.u32 %v1509_v29, %v1285_v30  ;;  %v1473_v34 = vld [vmem:[#allocation2 + $0x84] sm:$0xf]  ;;  %v1141_v35 = vld [vmem:[#allocation2 + $0x90] sm:$0xf0]  ;;  %v1476_v37 = vld [vmem:[#allocation2 + $0x94] sm:$0xf0]  ;;  %v1722_v40 = vor.u32 %v1475_v33, %v1139_v32 }
  0x3e   :  { %642 = vmatmul.bf16.gmra.mxu0 %v1686_v24  ;;  %975 = vmatpush.bf16.msrb.mxu3 %v1432_v36  ;;  %v1147_v36 = vld [vmem:[#allocation2 + $0x88] sm:$0xf]  ;;  %v1474_v38 = vld [vmem:[#allocation2 + $0x8c] sm:$0xf]  ;;  %v1149_v39 = vld [vmem:[#allocation2 + $0x98] sm:$0xf0]  ;;  %v1724_v41 = vor.u32 %v1473_v34, %v1141_v35 }
  0x3f   :  { %691 = vmatmul.bf16.gmra.mxu1 %v1688_v25  ;;  %829 = vmatpush.bf16.msrb.mxu0 %v1232_v63  ;;  %v1726_v42 = vor.u32 %v1476_v37, %v1147_v36  ;;  %v1728_v43 = vor.u32 %v1474_v38, %v1149_v39  ;;  %v1523_v44 = vld [vmem:[#allocation5 + $0x114] sm:$0xf]  ;;  %v1341_v45 = vld [vmem:[#allocation5 + $0x118] sm:$0xf0]  ;;  %v1479_v1 = vld [vmem:[#allocation2 + $0xac] sm:$0xf0] }
  0x40   :  { %740 = vmatmul.bf16.gmra.mxu2 %v1690_v26  ;;  %878 = vmatpush.bf16.msrb.mxu1 %v1296_v3  ;;  %v1491_v46 = vld [vmem:[#allocation5 + $0x14] sm:$0xf]  ;;  %v1344_v47 = vor.u32 %v1523_v44, %v1341_v45  ;;  %v1213_v55 = vld [vmem:[#allocation5 + $0x18] sm:$0xf0]  ;;  %v1477_v2 = vld [vmem:[#allocation2 + $0xa4] sm:$0xf] }
  0x41   :  { %789 = vmatmul.bf16.gmra.mxu3 %v1692_v27  ;;  %927 = vmatpush.bf16.msrb.mxu2 %v1360_v59  ;;  %v1539_v56 = vld [vmem:[#allocation5 + $0x194] sm:$0xf]  ;;  %v1405_v58 = vld [vmem:[#allocation5 + $0x198] sm:$0xf0]  ;;  %v1216_v59 = vor.u32 %v1491_v46, %v1213_v55  ;;  %v1163_v4 = vld [vmem:[#allocation2 + $0xa8] sm:$0xf] }
  0x42   :  { %976 = vmatpush.bf16.msrb.mxu3 %v1424_v0  ;;  %v1408_v60 = vor.u32 %v1539_v56, %v1405_v58  ;;  %v1507_v61 = vld [vmem:[#allocation5 + $0x94] sm:$0xf]  ;;  %v1277_v62 = vld [vmem:[#allocation5 + $0x98] sm:$0xf0]  ;;  %v1155_v0 = vld [vmem:[#allocation2 + $0xa0] sm:$0xf] }
  0x43   :  { %830 = vmatpush.bf16.msrb.mxu0 %v1224_v23  ;;  %v1280_v63 = vor.u32 %v1507_v61, %v1277_v62  ;;  %v1157_v3 = vld [vmem:[#allocation2 + $0xb0] sm:$0xf0]  ;;  %v1480_v5 = vld [vmem:[#allocation2 + $0xb4] sm:$0xf0]  ;;  %v1478_v6 = vld [vmem:[#allocation2 + $0xac] sm:$0xf]  ;;  %v1734_v8 = vor.u32 %v1479_v1, %v1155_v0 }
  0x44   :  { %879 = vmatpush.bf16.msrb.mxu1 %v1288_v31  ;;  %v1165_v7 = vld [vmem:[#allocation2 + $0xb8] sm:$0xf0]  ;;  %v1736_v9 = vor.u32 %v1477_v2, %v1157_v3  ;;  %v1738_v10 = vor.u32 %v1480_v5, %v1163_v4  ;;  %v1521_v16 = vld [vmem:[#allocation5 + $0x104] sm:$0xf]  ;;  %v1333_v17 = vld [vmem:[#allocation5 + $0x108] sm:$0xf0] }
  0x45   :  { %928 = vmatpush.bf16.msrb.mxu2 %v1352_v19  ;;  %v1740_v11 = vor.u32 %v1478_v6, %v1165_v7  ;;  %v1489_v18 = vld [vmem:[#allocation5 + $0x4] sm:$0xf]  ;;  %v1336_v19 = vor.u32 %v1521_v16, %v1333_v17  ;;  %v1205_v20 = vld [vmem:[#allocation5 + $0x8] sm:$0xf0]  ;;  %v1171_v32 = vld [vmem:[#allocation2 + $0xc0] sm:$0xf] }
  0x46   :  { %977 = vmatpush.bf16.msrb.mxu3 %v1416_v28  ;;  %v1537_v21 = vld [vmem:[#allocation5 + $0x184] sm:$0xf]  ;;  %v1397_v22 = vld [vmem:[#allocation5 + $0x188] sm:$0xf0]  ;;  %v1208_v23 = vor.u32 %v1489_v18, %v1205_v20  ;;  %v1483_v33 = vld [vmem:[#allocation2 + $0xcc] sm:$0xf0] }
  0x47   :  { %831 = vmatpush.bf16.msrb.mxu0 %v1216_v59  ;;  %v1400_v28 = vor.u32 %v1537_v21, %v1397_v22  ;;  %v1505_v29 = vld [vmem:[#allocation5 + $0x84] sm:$0xf]  ;;  %v1269_v30 = vld [vmem:[#allocation5 + $0x88] sm:$0xf0]  ;;  %v1173_v35 = vld [vmem:[#allocation2 + $0xd0] sm:$0xf0]  ;;  %v1746_v44 = vor.u32 %v1483_v33, %v1171_v32 }
  0x48   :  { %880 = vmatpush.bf16.msrb.mxu1 %v1280_v63  ;;  %v1272_v31 = vor.u32 %v1505_v29, %v1269_v30  ;;  %v1481_v34 = vld [vmem:[#allocation2 + $0xc4] sm:$0xf]  ;;  %v1179_v36 = vld [vmem:[#allocation2 + $0xc8] sm:$0xf]  ;;  %v1484_v37 = vld [vmem:[#allocation2 + $0xd4] sm:$0xf0] }
  0x49   :  { %929 = vmatpush.bf16.msrb.mxu2 %v1344_v47  ;;  %v1482_v38 = vld [vmem:[#allocation2 + $0xcc] sm:$0xf]  ;;  %v1181_v39 = vld [vmem:[#allocation2 + $0xd8] sm:$0xf0]  ;;  %v1748_v45 = vor.u32 %v1481_v34, %v1173_v35  ;;  %v1750_v46 = vor.u32 %v1484_v37, %v1179_v36  ;;  %v1187_v55 = vld [vmem:[#allocation2 + $0xe0] sm:$0xf] }
  0x4a   :  { %978 = vmatpush.bf16.msrb.mxu3 %v1408_v60  ;;  %v1752_v47 = vor.u32 %v1482_v38, %v1181_v39  ;;  %v1487_v56 = vld [vmem:[#allocation2 + $0xec] sm:$0xf0]  ;;  %v1485_v58 = vld [vmem:[#allocation2 + $0xe4] sm:$0xf]  ;;  %v1189_v59 = vld [vmem:[#allocation2 + $0xf0] sm:$0xf0] }
  0x4b   :  { %832 = vmatpush.bf16.msrb.mxu0 %v1208_v23  ;;  %v1195_v60 = vld [vmem:[#allocation2 + $0xe8] sm:$0xf]  ;;  %v1488_v61 = vld [vmem:[#allocation2 + $0xf4] sm:$0xf0]  ;;  %v1486_v62 = vld [vmem:[#allocation2 + $0xec] sm:$0xf]  ;;  %v1758_v0 = vor.u32 %v1487_v56, %v1187_v55  ;;  %v1760_v1 = vor.u32 %v1485_v58, %v1189_v59 }
  0x4c   :  { %881 = vmatpush.bf16.msrb.mxu1 %v1272_v31  ;;  %v1197_v63 = vld [vmem:[#allocation2 + $0xf8] sm:$0xf0]  ;;  %v1762_v2 = vor.u32 %v1488_v61, %v1195_v60  ;;  %v1773_v4 = vld [vmem:[%s1853_s2] sm:$0x3]  ;;  %s1644_s2 = smov [#allocation7]   ;;  %s1059_s29 = sshll.u32 %s1854_s3, 4  ;;  %s1060_s29 = int_to_ptr.hbm [resolvable:$true] %s1059_s29 }
  0x4d   :  { %930 = vmatpush.bf16.msrb.mxu2 %v1336_v19  ;;  %v1764_v3 = vor.u32 %v1486_v62, %v1197_v63  ;;  %v1776_v5 = vperm.slane %v1773_v4, 0  ;;  %s1057_s26 = sshll.u32 %s1644_s2, 4  ;;  %s1058_s26 = int_to_ptr.vmem [resolvable:$true] %s1057_s26 }
  0x4e   :  { %647 = vmatmul.bf16.gmra.mxu0 %v1698_v49  ;;  %979 = vmatpush.bf16.msrb.mxu3 %v1400_v28 }
  0x4f   :  { %696 = vmatmul.bf16.gmra.mxu1 %v1700_v50 }
  0x50   :  { %745 = vmatmul.bf16.gmra.mxu2 %v1702_v51 }
  0x51   :  { %794 = vmatmul.bf16.gmra.mxu3 %v1704_v52 }
  0x5e   :  { %652 = vmatmul.bf16.gmra.mxu0 %v1710_v12 }
  0x5f   :  { %701 = vmatmul.bf16.gmra.mxu1 %v1712_v13 }
  0x60   :  { %750 = vmatmul.bf16.gmra.mxu2 %v1714_v14 }
  0x61   :  { %799 = vmatmul.bf16.gmra.mxu3 %v1716_v15 }
  0x6e   :  { %657 = vmatmul.bf16.gmra.mxu0 %v1722_v40 }
  0x6f   :  { %706 = vmatmul.bf16.gmra.mxu1 %v1724_v41 }
  0x70   :  { %755 = vmatmul.bf16.gmra.mxu2 %v1726_v42 }
  0x71   :  { %804 = vmatmul.bf16.gmra.mxu3 %v1728_v43 }
  0x7e   :  { %662 = vmatmul.bf16.gmra.mxu0 %v1734_v8 }
  0x7f   :  { %711 = vmatmul.bf16.gmra.mxu1 %v1736_v9 }
  0x80   :  { %760 = vmatmul.bf16.gmra.mxu2 %v1738_v10 }
  0x81   :  { %809 = vmatmul.bf16.gmra.mxu3 %v1740_v11 }
  0x8e   :  { %667 = vmatmul.bf16.gmra.mxu0 %v1746_v44 }
  0x8f   :  { %716 = vmatmul.bf16.gmra.mxu1 %v1748_v45 }
  0x90   :  { %765 = vmatmul.bf16.gmra.mxu2 %v1750_v46 }
  0x91   :  { %814 = vmatmul.bf16.gmra.mxu3 %v1752_v47 }
  0x9e   :  { %672 = vmatmul.bf16.gmra.mxu0 %v1758_v0 }
  0x9f   :  { %721 = vmatmul.bf16.gmra.mxu1 %v1760_v1 }
  0xa0   :  { %770 = vmatmul.bf16.gmra.mxu2 %v1762_v2 }
  0xa1   :  { %819 = vmatmul.bf16.gmra.mxu3 %v1764_v3 }
  0xab   :  { %v638_v6 = vpop.f32.mrf.mxu0 }
  0xac   :  { %v639_v7 = vadd.f32 %v638_v6, %v1776_v5  ;;  %v687_v16 = vpop.f32.mrf.mxu1 }
  0xae   :  { %833 = vmatmul.bf16.vlgmr.msrb.gmra.mxu0 %v1674_v48  ;;  %v688_v17 = vadd.f32 %v687_v16, %v639_v7 }
  0xaf   :  { %882 = vmatmul.bf16.vlgmr.msrb.gmra.mxu1 %v1676_v53 }
  0xb0   :  { %931 = vmatmul.bf16.vlgmr.msrb.gmra.mxu2 %v1678_v54 }
  0xb1   :  { %980 = vmatmul.bf16.vlgmr.msrb.gmra.mxu3 %v1680_v57 }
  0xb3   :  { %v736_v18 = vpop.f32.mrf.mxu2  ;;  %v640_v21 = vpop.f32.mrf.mxu0 }
  0xb4   :  { %v737_v19 = vadd.f32 %v736_v18, %v688_v17  ;;  %v785_v20 = vpop.f32.mrf.mxu3  ;;  %v689_v22 = vpop.f32.mrf.mxu1  ;;  %v641_v28 = vadd.f32 %v640_v21, %v1776_v5 }
  0xb6   :  { %v786_v23 = vadd.f32 %v785_v20, %v737_v19  ;;  %v690_v29 = vadd.f32 %v689_v22, %v641_v28 }
  0xb8   :  { %1021 = vst [vmem:[#allocation7] sm:$0xff] %v786_v23 }
  0xbb   :  { %v738_v30 = vpop.f32.mrf.mxu2  ;;  %v643_v32 = vpop.f32.mrf.mxu0 }
  0xbc   :  { %v739_v31 = vadd.f32 %v738_v30, %v690_v29  ;;  %v787_v48 = vpop.f32.mrf.mxu3  ;;  %v644_v53 = vadd.f32 %v643_v32, %v1776_v5  ;;  %v692_v33 = vpop.f32.mrf.mxu1 }
  0xbe   :  { %v788_v54 = vadd.f32 %v787_v48, %v739_v31  ;;  %838 = vmatmul.bf16.gmra.mxu0 %v1686_v24  ;;  %v693_v57 = vadd.f32 %v692_v33, %v644_v53 }
  0xbf   :  { %887 = vmatmul.bf16.gmra.mxu1 %v1688_v25 }
  0xc0   :  { %1023 = vst [vmem:[#allocation7 + $0x10] sm:$0xff] %v788_v54  ;;  %936 = vmatmul.bf16.gmra.mxu2 %v1690_v26 }
  0xc1   :  { %985 = vmatmul.bf16.gmra.mxu3 %v1692_v27 }
  0xc3   :  { %v741_v34 = vpop.f32.mrf.mxu2  ;;  %v645_v37 = vpop.f32.mrf.mxu0 }
  0xc4   :  { %v742_v35 = vadd.f32 %v741_v34, %v693_v57  ;;  %v790_v36 = vpop.f32.mrf.mxu3  ;;  %v694_v38 = vpop.f32.mrf.mxu1  ;;  %v646_v55 = vadd.f32 %v645_v37, %v1776_v5 }
  0xc6   :  { %v791_v39 = vadd.f32 %v790_v36, %v742_v35  ;;  %v695_v56 = vadd.f32 %v694_v38, %v646_v55 }
  0xc8   :  { %1025 = vst [vmem:[#allocation7 + $0x20] sm:$0xff] %v791_v39 }
  0xcb   :  { %v743_v58 = vpop.f32.mrf.mxu2  ;;  %v648_v60 = vpop.f32.mrf.mxu0 }
  0xcc   :  { %v744_v24 = vadd.f32 %v743_v58, %v695_v56  ;;  %v792_v59 = vpop.f32.mrf.mxu3  ;;  %v649_v25 = vadd.f32 %v648_v60, %v1776_v5  ;;  %v697_v61 = vpop.f32.mrf.mxu1 }
  0xce   :  { %v793_v26 = vadd.f32 %v792_v59, %v744_v24  ;;  %843 = vmatmul.bf16.gmra.mxu0 %v1698_v49  ;;  %v698_v27 = vadd.f32 %v697_v61, %v649_v25 }
  0xcf   :  { %892 = vmatmul.bf16.gmra.mxu1 %v1700_v50 }
  0xd0   :  { %1027 = vst [vmem:[#allocation7 + $0x30] sm:$0xff] %v793_v26  ;;  %941 = vmatmul.bf16.gmra.mxu2 %v1702_v51 }
  0xd1   :  { %990 = vmatmul.bf16.gmra.mxu3 %v1704_v52 }
  0xd3   :  { %v746_v62 = vpop.f32.mrf.mxu2  ;;  %v650_v7 = vpop.f32.mrf.mxu0 }
  0xd4   :  { %v747_v63 = vadd.f32 %v746_v62, %v698_v27  ;;  %v795_v6 = vpop.f32.mrf.mxu3  ;;  %v699_v16 = vpop.f32.mrf.mxu1  ;;  %v651_v18 = vadd.f32 %v650_v7, %v1776_v5 }
  0xd6   :  { %v796_v17 = vadd.f32 %v795_v6, %v747_v63  ;;  %v700_v19 = vadd.f32 %v699_v16, %v651_v18 }
  0xd8   :  { %1029 = vst [vmem:[#allocation7 + $0x40] sm:$0xff] %v796_v17 }
  0xdb   :  { %v748_v20 = vpop.f32.mrf.mxu2  ;;  %v653_v22 = vpop.f32.mrf.mxu0 }
  0xdc   :  { %v749_v49 = vadd.f32 %v748_v20, %v700_v19  ;;  %v797_v21 = vpop.f32.mrf.mxu3  ;;  %v654_v50 = vadd.f32 %v653_v22, %v1776_v5  ;;  %v702_v23 = vpop.f32.mrf.mxu1 }
  0xde   :  { %v798_v51 = vadd.f32 %v797_v21, %v749_v49  ;;  %848 = vmatmul.bf16.gmra.mxu0 %v1710_v12  ;;  %v703_v52 = vadd.f32 %v702_v23, %v654_v50 }
  0xdf   :  { %897 = vmatmul.bf16.gmra.mxu1 %v1712_v13 }
  0xe0   :  { %1031 = vst [vmem:[#allocation7 + $0x50] sm:$0xff] %v798_v51  ;;  %946 = vmatmul.bf16.gmra.mxu2 %v1714_v14 }
  0xe1   :  { %995 = vmatmul.bf16.gmra.mxu3 %v1716_v15 }
  0xe3   :  { %v751_v28 = vpop.f32.mrf.mxu2  ;;  %v655_v31 = vpop.f32.mrf.mxu0 }
  0xe4   :  { %v752_v29 = vadd.f32 %v751_v28, %v703_v52  ;;  %v800_v30 = vpop.f32.mrf.mxu3  ;;  %v704_v48 = vpop.f32.mrf.mxu1  ;;  %v656_v53 = vadd.f32 %v655_v31, %v1776_v5 }
  0xe6   :  { %v801_v32 = vadd.f32 %v800_v30, %v752_v29  ;;  %v705_v33 = vadd.f32 %v704_v48, %v656_v53 }
  0xe8   :  { %1033 = vst [vmem:[#allocation7 + $0x60] sm:$0xff] %v801_v32 }
  0xeb   :  { %v753_v54 = vpop.f32.mrf.mxu2  ;;  %v658_v34 = vpop.f32.mrf.mxu0 }
  0xec   :  { %v754_v12 = vadd.f32 %v753_v54, %v705_v33  ;;  %v802_v57 = vpop.f32.mrf.mxu3  ;;  %v659_v13 = vadd.f32 %v658_v34, %v1776_v5  ;;  %v707_v35 = vpop.f32.mrf.mxu1 }
  0xee   :  { %v803_v14 = vadd.f32 %v802_v57, %v754_v12  ;;  %853 = vmatmul.bf16.gmra.mxu0 %v1722_v40  ;;  %v708_v15 = vadd.f32 %v707_v35, %v659_v13  ;;  %v1827_v35 = vperm.slane %v1773_v4, 1 }
  0xef   :  { %902 = vmatmul.bf16.gmra.mxu1 %v1724_v41 }
  0xf0   :  { %1035 = vst [vmem:[#allocation7 + $0x70] sm:$0xff] %v803_v14  ;;  %951 = vmatmul.bf16.gmra.mxu2 %v1726_v42 }
  0xf1   :  { %1000 = vmatmul.bf16.gmra.mxu3 %v1728_v43 }
  0xf3   :  { %v756_v36 = vpop.f32.mrf.mxu2  ;;  %v660_v39 = vpop.f32.mrf.mxu0 }
  0xf4   :  { %v757_v37 = vadd.f32 %v756_v36, %v708_v15  ;;  %v805_v38 = vpop.f32.mrf.mxu3  ;;  %v709_v55 = vpop.f32.mrf.mxu1  ;;  %v661_v58 = vadd.f32 %v660_v39, %v1776_v5 }
  0xf6   :  { %v806_v56 = vadd.f32 %v805_v38, %v757_v37  ;;  %v710_v24 = vadd.f32 %v709_v55, %v661_v58 }
  0xf8   :  { %1037 = vst [vmem:[#allocation7 + $0x80] sm:$0xff] %v806_v56 }
  0xfb   :  { %v758_v59 = vpop.f32.mrf.mxu2  ;;  %v663_v25 = vpop.f32.mrf.mxu0 }
  0xfc   :  { %v759_v40 = vadd.f32 %v758_v59, %v710_v24  ;;  %v807_v60 = vpop.f32.mrf.mxu3  ;;  %v664_v41 = vadd.f32 %v663_v25, %v1776_v5  ;;  %v712_v61 = vpop.f32.mrf.mxu1 }
  0xfe   :  { %v808_v42 = vadd.f32 %v807_v60, %v759_v40  ;;  %858 = vmatmul.bf16.gmra.mxu0 %v1734_v8  ;;  %v713_v43 = vadd.f32 %v712_v61, %v664_v41 }
  0xff   :  { %907 = vmatmul.bf16.gmra.mxu1 %v1736_v9 }
 0x100   :  { %1039 = vst [vmem:[#allocation7 + $0x90] sm:$0xff] %v808_v42  ;;  %956 = vmatmul.bf16.gmra.mxu2 %v1738_v10 }
 0x101   :  { %1005 = vmatmul.bf16.gmra.mxu3 %v1740_v11 }
 0x103   :  { %v761_v26 = vpop.f32.mrf.mxu2  ;;  %v665_v63 = vpop.f32.mrf.mxu0 }
 0x104   :  { %v762_v27 = vadd.f32 %v761_v26, %v713_v43  ;;  %v810_v62 = vpop.f32.mrf.mxu3  ;;  %v714_v6 = vpop.f32.mrf.mxu1  ;;  %v666_v16 = vadd.f32 %v665_v63, %v1776_v5 }
 0x106   :  { %v811_v7 = vadd.f32 %v810_v62, %v762_v27  ;;  %v715_v17 = vadd.f32 %v714_v6, %v666_v16 }
 0x108   :  { %1041 = vst [vmem:[#allocation7 + $0xa0] sm:$0xff] %v811_v7 }
 0x10b   :  { %v763_v18 = vpop.f32.mrf.mxu2  ;;  %v668_v20 = vpop.f32.mrf.mxu0 }
 0x10c   :  { %v764_v8 = vadd.f32 %v763_v18, %v715_v17  ;;  %v812_v19 = vpop.f32.mrf.mxu3  ;;  %v669_v9 = vadd.f32 %v668_v20, %v1776_v5  ;;  %v717_v49 = vpop.f32.mrf.mxu1 }
 0x10e   :  { %v813_v10 = vadd.f32 %v812_v19, %v764_v8  ;;  %863 = vmatmul.bf16.gmra.mxu0 %v1746_v44  ;;  %v718_v11 = vadd.f32 %v717_v49, %v669_v9 }
 0x10f   :  { %912 = vmatmul.bf16.gmra.mxu1 %v1748_v45 }
 0x110   :  { %1043 = vst [vmem:[#allocation7 + $0xb0] sm:$0xff] %v813_v10  ;;  %961 = vmatmul.bf16.gmra.mxu2 %v1750_v46 }
 0x111   :  { %1010 = vmatmul.bf16.gmra.mxu3 %v1752_v47 }
 0x113   :  { %v766_v21 = vpop.f32.mrf.mxu2  ;;  %v670_v23 = vpop.f32.mrf.mxu0 }
 0x114   :  { %v767_v22 = vadd.f32 %v766_v21, %v718_v11  ;;  %v815_v50 = vpop.f32.mrf.mxu3  ;;  %v719_v51 = vpop.f32.mrf.mxu1  ;;  %v671_v28 = vadd.f32 %v670_v23, %v1776_v5 }
 0x116   :  { %v816_v52 = vadd.f32 %v815_v50, %v767_v22  ;;  %v720_v29 = vadd.f32 %v719_v51, %v671_v28 }
 0x118   :  { %1045 = vst [vmem:[#allocation7 + $0xc0] sm:$0xff] %v816_v52 }
 0x11b   :  { %v768_v30 = vpop.f32.mrf.mxu2  ;;  %v673_v48 = vpop.f32.mrf.mxu0 }
 0x11c   :  { %v769_v44 = vadd.f32 %v768_v30, %v720_v29  ;;  %v817_v31 = vpop.f32.mrf.mxu3  ;;  %v674_v45 = vadd.f32 %v673_v48, %v1776_v5  ;;  %v722_v32 = vpop.f32.mrf.mxu1 }
 0x11e   :  { %v818_v46 = vadd.f32 %v817_v31, %v769_v44  ;;  %868 = vmatmul.bf16.gmra.mxu0 %v1758_v0  ;;  %v723_v47 = vadd.f32 %v722_v32, %v674_v45 }
 0x11f   :  { %917 = vmatmul.bf16.gmra.mxu1 %v1760_v1 }
 0x120   :  { %1047 = vst [vmem:[#allocation7 + $0xd0] sm:$0xff] %v818_v46  ;;  %966 = vmatmul.bf16.gmra.mxu2 %v1762_v2 }
 0x121   :  { %1015 = vmatmul.bf16.gmra.mxu3 %v1764_v3 }
 0x123   :  { %v771_v53 = vpop.f32.mrf.mxu2  ;;  %v675_v12 = vpop.f32.mrf.mxu0 }
 0x124   :  { %v772_v33 = vadd.f32 %v771_v53, %v723_v47  ;;  %v820_v54 = vpop.f32.mrf.mxu3  ;;  %v724_v57 = vpop.f32.mrf.mxu1  ;;  %v676_v13 = vadd.f32 %v675_v12, %v1776_v5 }
 0x126   :  { %v821_v34 = vadd.f32 %v820_v54, %v772_v33  ;;  %v725_v0 = vadd.f32 %v724_v57, %v676_v13 }
 0x128   :  { %1049 = vst [vmem:[#allocation7 + $0xe0] sm:$0xff] %v821_v34 }
 0x12b   :  { %v773_v14 = vpop.f32.mrf.mxu2  ;;  %v834_v36 = vpop.f32.mrf.mxu0 }
 0x12c   :  { %v774_v15 = vadd.f32 %v773_v14, %v725_v0  ;;  %v822_v1 = vpop.f32.mrf.mxu3  ;;  %v835_v2 = vadd.f32 %v834_v36, %v1827_v35  ;;  %v883_v3 = vpop.f32.mrf.mxu1 }
 0x12e   :  { %v823_v37 = vadd.f32 %v822_v1, %v774_v15  ;;  %v884_v38 = vadd.f32 %v883_v3, %v835_v2 }
 0x130   :  { %1051 = vst [vmem:[#allocation7 + $0xf0] sm:$0xff] %v823_v37 }
 0x133   :  { %v932_v39 = vpop.f32.mrf.mxu2  ;;  %v836_v58 = vpop.f32.mrf.mxu0 }
 0x134   :  { %v933_v55 = vadd.f32 %v932_v39, %v884_v38  ;;  %v981_v56 = vpop.f32.mrf.mxu3  ;;  %v885_v5 = vpop.f32.mrf.mxu1  ;;  %v837_v4 = vadd.f32 %v836_v58, %v1827_v35 }
 0x136   :  { %v982_v24 = vadd.f32 %v981_v56, %v933_v55  ;;  %v886_v59 = vadd.f32 %v885_v5, %v837_v4 }
 0x138   :  { %1022 = vst [vmem:[#allocation7 + $0x8] sm:$0xff] %v982_v24 }
 0x13b   :  { %v934_v40 = vpop.f32.mrf.mxu2  ;;  %v839_v41 = vpop.f32.mrf.mxu0 }
 0x13c   :  { %v935_v60 = vadd.f32 %v934_v40, %v886_v59  ;;  %v983_v25 = vpop.f32.mrf.mxu3  ;;  %v840_v61 = vadd.f32 %v839_v41, %v1827_v35  ;;  %v888_v42 = vpop.f32.mrf.mxu1 }
 0x13e   :  { %v984_v43 = vadd.f32 %v983_v25, %v935_v60  ;;  %v889_v26 = vadd.f32 %v888_v42, %v840_v61 }
 0x140   :  { %1024 = vst [vmem:[#allocation7 + $0x18] sm:$0xff] %v984_v43 }
 0x143   :  { %v937_v27 = vpop.f32.mrf.mxu2  ;;  %v841_v6 = vpop.f32.mrf.mxu0 }
 0x144   :  { %v938_v62 = vadd.f32 %v937_v27, %v889_v26  ;;  %v986_v63 = vpop.f32.mrf.mxu3  ;;  %v890_v7 = vpop.f32.mrf.mxu1  ;;  %v842_v17 = vadd.f32 %v841_v6, %v1827_v35 }
 0x146   :  { %v987_v16 = vadd.f32 %v986_v63, %v938_v62  ;;  %v891_v18 = vadd.f32 %v890_v7, %v842_v17 }
 0x148   :  { %1026 = vst [vmem:[#allocation7 + $0x28] sm:$0xff] %v987_v16 }
 0x14b   :  { %v939_v8 = vpop.f32.mrf.mxu2  ;;  %v844_v9 = vpop.f32.mrf.mxu0 }
 0x14c   :  { %v940_v19 = vadd.f32 %v939_v8, %v891_v18  ;;  %v988_v20 = vpop.f32.mrf.mxu3  ;;  %v845_v49 = vadd.f32 %v844_v9, %v1827_v35  ;;  %v893_v10 = vpop.f32.mrf.mxu1 }
 0x14e   :  { %v989_v11 = vadd.f32 %v988_v20, %v940_v19  ;;  %v894_v21 = vadd.f32 %v893_v10, %v845_v49 }
 0x150   :  { %1028 = vst [vmem:[#allocation7 + $0x38] sm:$0xff] %v989_v11 }
 0x153   :  { %v942_v22 = vpop.f32.mrf.mxu2  ;;  %v846_v51 = vpop.f32.mrf.mxu0 }
 0x154   :  { %v943_v50 = vadd.f32 %v942_v22, %v894_v21  ;;  %v991_v23 = vpop.f32.mrf.mxu3  ;;  %v895_v52 = vpop.f32.mrf.mxu1  ;;  %v847_v29 = vadd.f32 %v846_v51, %v1827_v35 }
 0x156   :  { %v992_v28 = vadd.f32 %v991_v23, %v943_v50  ;;  %v896_v30 = vadd.f32 %v895_v52, %v847_v29 }
 0x158   :  { %1030 = vst [vmem:[#allocation7 + $0x48] sm:$0xff] %v992_v28 }
 0x15b   :  { %v944_v44 = vpop.f32.mrf.mxu2  ;;  %v849_v45 = vpop.f32.mrf.mxu0 }
 0x15c   :  { %v945_v31 = vadd.f32 %v944_v44, %v896_v30  ;;  %v993_v48 = vpop.f32.mrf.mxu3  ;;  %v850_v32 = vadd.f32 %v849_v45, %v1827_v35  ;;  %v898_v46 = vpop.f32.mrf.mxu1 }
 0x15e   :  { %v994_v47 = vadd.f32 %v993_v48, %v945_v31  ;;  %v899_v53 = vadd.f32 %v898_v46, %v850_v32 }
 0x160   :  { %1032 = vst [vmem:[#allocation7 + $0x58] sm:$0xff] %v994_v47 }
 0x163   :  { %v947_v33 = vpop.f32.mrf.mxu2  ;;  %v851_v57 = vpop.f32.mrf.mxu0 }
 0x164   :  { %v948_v54 = vadd.f32 %v947_v33, %v899_v53  ;;  %v996_v12 = vpop.f32.mrf.mxu3  ;;  %v900_v34 = vpop.f32.mrf.mxu1  ;;  %v852_v0 = vadd.f32 %v851_v57, %v1827_v35 }
 0x166   :  { %v997_v13 = vadd.f32 %v996_v12, %v948_v54  ;;  %v901_v14 = vadd.f32 %v900_v34, %v852_v0 }
 0x168   :  { %1034 = vst [vmem:[#allocation7 + $0x68] sm:$0xff] %v997_v13 }
 0x16b   :  { %v949_v15 = vpop.f32.mrf.mxu2  ;;  %v854_v2 = vpop.f32.mrf.mxu0 }
 0x16c   :  { %v950_v1 = vadd.f32 %v949_v15, %v901_v14  ;;  %v998_v36 = vpop.f32.mrf.mxu3  ;;  %v855_v3 = vadd.f32 %v854_v2, %v1827_v35  ;;  %v903_v37 = vpop.f32.mrf.mxu1 }
 0x16e   :  { %v999_v38 = vadd.f32 %v998_v36, %v950_v1  ;;  %v904_v39 = vadd.f32 %v903_v37, %v855_v3 }
 0x170   :  { %1036 = vst [vmem:[#allocation7 + $0x78] sm:$0xff] %v999_v38 }
 0x173   :  { %v952_v55 = vpop.f32.mrf.mxu2  ;;  %v856_v5 = vpop.f32.mrf.mxu0 }
 0x174   :  { %v953_v56 = vadd.f32 %v952_v55, %v904_v39  ;;  %v1001_v58 = vpop.f32.mrf.mxu3  ;;  %v905_v24 = vpop.f32.mrf.mxu1  ;;  %v857_v59 = vadd.f32 %v856_v5, %v1827_v35 }
 0x176   :  { %v1002_v4 = vadd.f32 %v1001_v58, %v953_v56  ;;  %v906_v40 = vadd.f32 %v905_v24, %v857_v59 }
 0x178   :  { %1038 = vst [vmem:[#allocation7 + $0x88] sm:$0xff] %v1002_v4 }
 0x17b   :  { %v954_v60 = vpop.f32.mrf.mxu2  ;;  %v859_v61 = vpop.f32.mrf.mxu0 }
 0x17c   :  { %v955_v25 = vadd.f32 %v954_v60, %v906_v40  ;;  %v1003_v41 = vpop.f32.mrf.mxu3  ;;  %v860_v42 = vadd.f32 %v859_v61, %v1827_v35  ;;  %v908_v43 = vpop.f32.mrf.mxu1 }
 0x17e   :  { %v1004_v26 = vadd.f32 %v1003_v41, %v955_v25  ;;  %v909_v27 = vadd.f32 %v908_v43, %v860_v42 }
 0x180   :  { %1040 = vst [vmem:[#allocation7 + $0x98] sm:$0xff] %v1004_v26 }
 0x183   :  { %v957_v62 = vpop.f32.mrf.mxu2  ;;  %v861_v7 = vpop.f32.mrf.mxu0 }
 0x184   :  { %v958_v63 = vadd.f32 %v957_v62, %v909_v27  ;;  %v1006_v6 = vpop.f32.mrf.mxu3  ;;  %v910_v16 = vpop.f32.mrf.mxu1  ;;  %v862_v18 = vadd.f32 %v861_v7, %v1827_v35 }
 0x186   :  { %v1007_v17 = vadd.f32 %v1006_v6, %v958_v63  ;;  %v911_v8 = vadd.f32 %v910_v16, %v862_v18 }
 0x188   :  { %1042 = vst [vmem:[#allocation7 + $0xa8] sm:$0xff] %v1007_v17 }
 0x18b   :  { %v959_v19 = vpop.f32.mrf.mxu2  ;;  %v864_v49 = vpop.f32.mrf.mxu0 }
 0x18c   :  { %v960_v20 = vadd.f32 %v959_v19, %v911_v8  ;;  %v1008_v9 = vpop.f32.mrf.mxu3  ;;  %v865_v10 = vadd.f32 %v864_v49, %v1827_v35  ;;  %v913_v11 = vpop.f32.mrf.mxu1 }
 0x18e   :  { %v1009_v21 = vadd.f32 %v1008_v9, %v960_v20  ;;  %v914_v22 = vadd.f32 %v913_v11, %v865_v10 }
 0x190   :  { %1044 = vst [vmem:[#allocation7 + $0xb8] sm:$0xff] %v1009_v21 }
 0x193   :  { %v962_v50 = vpop.f32.mrf.mxu2  ;;  %v866_v52 = vpop.f32.mrf.mxu0 }
 0x194   :  { %v963_v23 = vadd.f32 %v962_v50, %v914_v22  ;;  %v1011_v51 = vpop.f32.mrf.mxu3  ;;  %v915_v28 = vpop.f32.mrf.mxu1  ;;  %v867_v30 = vadd.f32 %v866_v52, %v1827_v35 }
 0x196   :  { %v1012_v29 = vadd.f32 %v1011_v51, %v963_v23  ;;  %v916_v44 = vadd.f32 %v915_v28, %v867_v30 }
 0x198   :  { %1046 = vst [vmem:[#allocation7 + $0xc8] sm:$0xff] %v1012_v29 }
 0x19b   :  { %v964_v31 = vpop.f32.mrf.mxu2  ;;  %v869_v32 = vpop.f32.mrf.mxu0 }
 0x19c   :  { %v965_v48 = vadd.f32 %v964_v31, %v916_v44  ;;  %v1013_v45 = vpop.f32.mrf.mxu3  ;;  %v870_v46 = vadd.f32 %v869_v32, %v1827_v35  ;;  %v918_v53 = vpop.f32.mrf.mxu1 }
 0x19e   :  { %v1014_v47 = vadd.f32 %v1013_v45, %v965_v48  ;;  %v919_v33 = vadd.f32 %v918_v53, %v870_v46 }
 0x1a0   :  { %1048 = vst [vmem:[#allocation7 + $0xd8] sm:$0xff] %v1014_v47 }
 0x1a3   :  { %v967_v54 = vpop.f32.mrf.mxu2  ;;  %v871_v34 = vpop.f32.mrf.mxu0 }
 0x1a4   :  { %v968_v12 = vadd.f32 %v967_v54, %v919_v33  ;;  %v1016_v57 = vpop.f32.mrf.mxu3  ;;  %v872_v0 = vadd.f32 %v871_v34, %v1827_v35  ;;  %v920_v14 = vpop.f32.mrf.mxu1 }
 0x1a6   :  { %v1017_v13 = vadd.f32 %v1016_v57, %v968_v12  ;;  %v921_v15 = vadd.f32 %v920_v14, %v872_v0 }
 0x1a8   :  { %1050 = vst [vmem:[#allocation7 + $0xe8] sm:$0xff] %v1017_v13 }
 0x1ab   :  { %v969_v1 = vpop.f32.mrf.mxu2 }
 0x1ac   :  { %v970_v36 = vadd.f32 %v969_v1, %v921_v15  ;;  %v1018_v2 = vpop.f32.mrf.mxu3 }
 0x1ae   :  { %v1019_v3 = vadd.f32 %v1018_v2, %v970_v36 }
 0x1b0   :  { %1052 = vst [vmem:[#allocation7 + $0xf8] sm:$0xff] %v1019_v3 }
 0x1b1   :  { %1065 = dma.vmem_to_hbm [thread:$0]  %s1058_s26, 4096, %s1060_s29, [#allocation4], %s1639_s20, %s1639_s20, %s1640_s21  }
 0x1b2   :  { %1636 = dma.done.wait [#allocation4], 4096  }
 0x1b3   :  { %1637 = vsyncadd [#allocation4], 4294963200 }
 0x1b4   :  { %1070 = vsyncpa [#allocation3], 1 }
 0x1b5   :  { %1071 = vsyncpa [#allocation6], 1 }
 0x1b6   :  { %1072 = vsyncpa [#allocation4], 1 }

</bundles_post_ra>
